<compile_context>
chip_gen: v7x
topology: tpu7x:2x2x1
jax: 0.10.0
libtpu: 0.0.40
codegen_flags: <defaults>
</compile_context>

<pallas_src>
import functools
import math

import jax
import jax.numpy as jnp
from jax import lax
from jax.experimental import pallas as pl
from jax.experimental.pallas import tpu as pltpu


_LANES = 128
_MAX_TM = 2048                           # default max lane tile (widened if N tiny)
_INPUT_VMEM_BUDGET = 16 * 1024 * 1024    # bytes for the double-buffered input tile
_MIN_SPLIT_TILE_BYTES = 4 * 1024 * 1024  # don't split lanes across TCs below this
_FOLD_TARGET_LANES = 1024                # lane-width target for the folded small-M path
_VMEM_LIMIT_BYTES = 48 * 1024 * 1024     # <= 48 MiB: safe on v7x (64 MiB physical VMEM)


def _round_up(x: int, k: int) -> int:
    return ((x + k - 1) // k) * k


def _round_down(x: int, k: int) -> int:
    return (x // k) * k


@functools.lru_cache(maxsize=None)
def _num_tensorcores_per_chip() -> int:
    """Best-effort TensorCores-per-chip query (v5e/v6e: 1, v7x: 2).

    Defaults to 1 (the recommended single-TC behaviour for v5e/v6e) when the
    information is unavailable."""
    try:
        info = pltpu.get_tpu_info()
    except Exception:
        return 1
    for name in ("tensorcores_per_chip", "num_tensorcores_per_chip",
                 "num_cores_per_chip", "cores_per_chip", "num_tensorcores",
                 "num_cores"):
        v = getattr(info, name, None)
        if isinstance(v, int) and 1 <= v <= 8:
            return min(v, 2)
    return 1


def _choose_tiles(n_rows: int, m_lanes: int, itemsize: int, num_tc: int):
    """Pick (tn, tm) so each pipelined input buffer is ~8 MiB."""
    pack = max(8, 32 // itemsize)          # sublane packing: f32 8, bf16 16, int8 32
    per_buf = _INPUT_VMEM_BUDGET // 2      # bytes per input buffer (double-buffered)

    # --- lane tile ---
    if m_lanes <= _MAX_TM:
        tm = m_lanes                       # full lane extent -> always a legal block
    else:
        tm_blocks = _MAX_TM // _LANES
        # If the whole reduction axis can't fill the buffer, widen the lane
        # tile instead (fewer, larger DMAs on single-TC parts).
        rows = _round_up(max(n_rows, 1), pack)
        if rows * _MAX_TM * itemsize < per_buf:
            tm_blocks = min(pl.cdiv(m_lanes, _LANES),
                            max(tm_blocks, per_buf // (rows * itemsize * _LANES)))
        if tm_blocks * _LANES >= m_lanes:
            tm = m_lanes                   # would cover everything: use full extent
        else:
            tm = tm_blocks * _LANES

    # Optional multi-TensorCore (v7x) split of the lane axis: only if the
    # per-step tile stays large enough that step overhead doesn't eat the gain.
    if num_tc >= 2 and pl.cdiv(m_lanes, tm) < num_tc and m_lanes >= num_tc * _LANES:
        cand_tm = _round_up(pl.cdiv(m_lanes, num_tc), _LANES)
        cand_cap = max(pack, _round_down(per_buf // (cand_tm * itemsize), pack))
        if cand_tm * min(n_rows, cand_cap) * itemsize >= _MIN_SPLIT_TILE_BYTES:
            tm = cand_tm

    # --- reduction tile, sized from the VMEM budget (no fixed 1024-row cap) ---
    cap = max(pack, _round_down(per_buf // (tm * itemsize), pack))
    tn = n_rows if n_rows <= cap else cap   # tn == n_rows (full dim) is always legal
    return tn, tm


def _utility(x, a: float):
    """Isoelastic utility u(x) on an f32 tile."""
    if a == 1.0:
        return jnp.log(x)
    if a == 0.5:
        return jnp.sqrt(x)                  # single EUP op instead of exp+log
    # TODO(synk): on v7x this path is EUP-bound; a bf16 log/exp variant for
    # bf16 inputs would halve EUP work if accuracy allows.
    return jnp.exp((1.0 - a) * jnp.log(x))


def _isoelastic_sum_kernel(x_ref, o_ref, acc_ref, *, a: float, inv_n: float,
                           n_valid_rows: int, tn: int, needs_row_mask: bool,
                           finalize_mean: bool):
    # x_ref:   (tn, tm) input tile (native dtype)
    # o_ref:   (1, tm)  output tile
    # acc_ref: (1, tm)  f32 running per-lane sum of u over the row (N) axis.
    k = pl.program_id(1)
    last_k = pl.num_programs(1) - 1

    @pl.when(k == 0)
    def _():
        acc_ref[...] = jnp.zeros_like(acc_ref)

    def accumulate(masked):
        u = _utility(x_ref[...].astype(jnp.float32), a)
        if masked:
            # Rows past n_valid_rows belong to a partial Pallas block (stale
            # data, possibly NaN/Inf after u); the select discards them.
            row = k * tn + lax.broadcasted_iota(jnp.int32, u.shape, 0)
            u = jnp.where(row < n_valid_rows, u, 0.0)
        acc_ref[...] += jnp.sum(u, axis=0, keepdims=True)

    if needs_row_mask:
        # Only the last reduction step can be ragged: keep iota/compare/select
        # off the steady-state path.
        @pl.when(k != last_k)
        def _():
            accumulate(masked=False)

        @pl.when(k == last_k)
        def _():
            accumulate(masked=True)
    else:
        accumulate(masked=False)

    @pl.when(k == last_k)
    def _():
        acc = acc_ref[...]
        if finalize_mean:
            o_ref[...] = (-(acc * inv_n)).astype(o_ref.dtype)   # -E[u(pnl)]
        else:
            o_ref[...] = acc.astype(o_ref.dtype)                # raw per-lane sums


def _launch(x2d: jax.Array, *, a: float, out_dtype, finalize_mean: bool,
            inv_n: float) -> jax.Array:
    n_rows, m_lanes = x2d.shape
    itemsize = jnp.dtype(x2d.dtype).itemsize
    tn, tm = _choose_tiles(n_rows, m_lanes, itemsize, _num_tensorcores_per_chip())
    m_tiles = pl.cdiv(m_lanes, tm)
    n_tiles = pl.cdiv(n_rows, tn)

    kernel = functools.partial(
        _isoelastic_sum_kernel,
        a=a, inv_n=inv_n, n_valid_rows=n_rows, tn=tn,
        needs_row_mask=(n_rows % tn != 0), finalize_mean=finalize_mean)

    return pl.pallas_call(
        kernel,
        out_shape=jax.ShapeDtypeStruct((1, m_lanes), out_dtype),
        grid_spec=pltpu.PrefetchScalarGridSpec(
            num_scalar_prefetch=0,
            grid=(m_tiles, n_tiles),                          # reduction axis last
            in_specs=[pl.BlockSpec((tn, tm), lambda i, k: (k, i))],
            out_specs=pl.BlockSpec((1, tm), lambda i, k: (0, i)),
            scratch_shapes=[pltpu.VMEM((1, tm), jnp.float32)],
        ),
        compiler_params=pltpu.CompilerParams(
            dimension_semantics=("parallel", "arbitrary"),
            vmem_limit_bytes=_VMEM_LIMIT_BYTES,
        ),
    )(x2d)


def isoelastic_loss(pnl: jax.Array, a: float) -> jax.Array:
    """Pallas implementation of IsoelasticLoss(a).forward(pnl).

    pnl: shape (N, *), assumed positive.  Returns loss of shape (*)."""
    if not 0.0 < a <= 1.0:
        raise ValueError(
            "Relative risk aversion coefficient should satisfy 0 < a <= 1.")
    a = float(a)

    n = pnl.shape[0]
    trailing = pnl.shape[1:]
    m = math.prod(trailing) if trailing else 1
    dtype = pnl.dtype

    x2d = pnl.reshape(n, m)                 # free row-major reshape, native dtype

    if m >= _LANES:
        # Wide output: one lane per output element, full reduce + mean in-kernel.
        out = _launch(x2d, a=a, out_dtype=dtype, finalize_mean=True, inv_n=1.0 / n)
        return out[0].reshape(trailing)

    # Narrow output (incl. the common (N,) -> scalar case): fold g rows into
    # the lane axis so all 128 lanes stay busy.
    g_target = max(1, _FOLD_TARGET_LANES // m)
    g = None
    for cand in range(min(g_target, n), 0, -1):     # prefer g | N: no pad pass
        if n % cand == 0 and cand * m >= _LANES:
            g = cand
            break
    pad_rows = 0
    if g is None:
        g = g_target
        pad_rows = (-n) % g
        if pad_rows:
            # Utility-neutral padding: u(pad) == 0 exactly (sqrt/pow of 0,
            # log of 1), so no correction term and no per-element masking.
            pad_val = 1.0 if a == 1.0 else 0.0
            x2d = jnp.pad(x2d, ((0, pad_rows), (0, 0)), constant_values=pad_val)
    rows = (n + pad_rows) // g
    folded = x2d.reshape(rows, g * m)

    sums = _launch(folded, a=a, out_dtype=jnp.float32, finalize_mean=False, inv_n=1.0)
    # Tiny epilogue (<= ~1K elements): fold the g row-groups back per column.
    col_sums = sums.reshape(g, m).sum(axis=0)
    loss = (-(col_sums / n)).astype(dtype)
    return loss.reshape(trailing)


if __name__ == "__main__":
    key = jax.random.PRNGKey(0)
    k0, k1, k2, k3 = jax.random.split(key, 4)

    # (N, *) = (8, 16, 16): wide-output path (M = 256 lanes); pnl must be > 0.
    pnl = jax.random.uniform(k0, (8, 16, 16), dtype=jnp.float32,
                             minval=0.5, maxval=2.0)
    checks = (
        (0.5, lambda x: -jnp.mean(jnp.sqrt(x), axis=0)),        # sqrt path
        (1.0, lambda x: -jnp.mean(jnp.log(x), axis=0)),         # log path
        (0.7, lambda x: -jnp.mean(x ** 0.3, axis=0)),           # general path
    )
    for a_val, ref_fn in checks:
        loss = isoelastic_loss(pnl, a_val)
        jax.block_until_ready(loss)
        ref = ref_fn(pnl)
        assert loss.shape == pnl.shape[1:]
        assert jnp.allclose(loss, ref, rtol=1e-5, atol=1e-5), f"mismatch a={a_val}"

    # (N,) -> scalar: folded path with a padded (utility-neutral) tail.
    pnl1 = jax.random.uniform(k1, (13,), dtype=jnp.float32, minval=0.5, maxval=2.0)
    loss1 = isoelastic_loss(pnl1, 0.5)
    jax.block_until_ready(loss1)
    assert loss1.shape == ()
    assert jnp.allclose(loss1, -jnp.mean(jnp.sqrt(pnl1)), rtol=1e-5, atol=1e-5)

    # (N, m) with small m where g divides N exactly (free reshape, no pad pass).
    pnl2 = jax.random.uniform(k2, (256, 3), dtype=jnp.float32, minval=0.5, maxval=2.0)
    loss2 = isoelastic_loss(pnl2, 1.0)
    jax.block_until_ready(loss2)
    assert loss2.shape == (3,)
    assert jnp.allclose(loss2, -jnp.mean(jnp.log(pnl2), axis=0), rtol=1e-5, atol=1e-5)

    # (N, m) with small m and prime N: folded path with padded tail, general a.
    pnl3 = jax.random.uniform(k3, (7, 5), dtype=jnp.float32, minval=0.5, maxval=2.0)
    loss3 = isoelastic_loss(pnl3, 0.7)
    jax.block_until_ready(loss3)
    assert loss3.shape == (5,)
    assert jnp.allclose(loss3, -jnp.mean(pnl3 ** 0.3, axis=0), rtol=1e-5, atol=1e-5)

    print("KERNEL_OK")
</pallas_src>

<mosaic_0001>
module attributes {stable_mosaic.version = 11 : i64} {
  func.func @_isoelastic_sum_kernel(%arg0: i32, %arg1: i32, %arg2: memref<8x256xf32, #tpu.memory_space<vmem>>, %arg3: memref<1x256xf32, #tpu.memory_space<vmem>>, %arg4: memref<1x256xf32, #tpu.memory_space<vmem>>) attributes {dimension_semantics = [#tpu.dimension_semantics<parallel>, #tpu.dimension_semantics<arbitrary>], iteration_bounds = array<i64: 1, 1>, scalar_prefetch = 0 : i64, scratch_operands = 1 : i64, tpu.core_type = #tpu.core_type<tc>, window_params = [{transform_indices = @transform_0, window_bounds = array<i64: 8, 256>}, {transform_indices = @transform_1, window_bounds = array<i64: 1, 256>}]} {
    %c0_i32 = arith.constant 0 : i32
    %0 = arith.cmpi eq, %arg1, %c0_i32 : i32
    %1 = arith.extui %0 : i1 to i32
    %c0_i32_0 = arith.constant 0 : i32
    %2 = arith.cmpi ne, %1, %c0_i32_0 : i32
    scf.if %2 {
      %cst_8 = arith.constant 0.000000e+00 : f32
      %13 = vector.broadcast %cst_8 : f32 to vector<1x256xf32>
      %c0_9 = arith.constant 0 : index
      %c0_10 = arith.constant 0 : index
      %14 = vector.load %arg4[%c0_9, %c0_10] : memref<1x256xf32, #tpu.memory_space<vmem>>, vector<1x256xf32>
      tpu.vector_store %arg4[%c0_9, %c0_10], %13 {strides = array<i32>} : memref<1x256xf32, #tpu.memory_space<vmem>>, vector<1x256xf32>,
    } else {
    }
    %c0 = arith.constant 0 : index
    %c0_1 = arith.constant 0 : index
    %3 = vector.load %arg2[%c0, %c0_1] : memref<8x256xf32, #tpu.memory_space<vmem>>, vector<8x256xf32>
    %4 = math.sqrt %3 : vector<8x256xf32>
    %c0_2 = arith.constant 0 : index
    %c0_3 = arith.constant 0 : index
    %5 = vector.load %arg4[%c0_2, %c0_3] : memref<1x256xf32, #tpu.memory_space<vmem>>, vector<1x256xf32>
    %cst = arith.constant dense<0.000000e+00> : vector<256xf32>
    %6 = vector.multi_reduction <add>, %4, %cst [0] : vector<8x256xf32> to vector<256xf32>
    %7 = vector.shape_cast %6 : vector<256xf32> to vector<1x256xf32>
    %8 = arith.addf %5, %7 : vector<1x256xf32>
    %c0_4 = arith.constant 0 : index
    %c0_5 = arith.constant 0 : index
    %9 = vector.load %arg4[%c0_4, %c0_5] : memref<1x256xf32, #tpu.memory_space<vmem>>, vector<1x256xf32>
    tpu.vector_store %arg4[%c0_4, %c0_5], %8 {strides = array<i32>} : memref<1x256xf32, #tpu.memory_space<vmem>>, vector<1x256xf32>,
    %c0_i32_6 = arith.constant 0 : i32
    %10 = arith.cmpi eq, %arg1, %c0_i32_6 : i32
    %11 = arith.extui %10 : i1 to i32
    %c0_i32_7 = arith.constant 0 : i32
    %12 = arith.cmpi ne, %11, %c0_i32_7 : i32
    scf.if %12 {
      %c0_8 = arith.constant 0 : index
      %c0_9 = arith.constant 0 : index
      %13 = vector.load %arg4[%c0_8, %c0_9] : memref<1x256xf32, #tpu.memory_space<vmem>>, vector<1x256xf32>
      %cst_10 = arith.constant 1.250000e-01 : f32
      %14 = vector.broadcast %cst_10 : f32 to vector<1x256xf32>
      %15 = arith.mulf %13, %14 : vector<1x256xf32>
      %cst_11 = arith.constant 0.000000e+00 : f32
      %16 = vector.broadcast %cst_11 : f32 to vector<1x256xf32>
      %17 = arith.subf %16, %15 : vector<1x256xf32>
      %c0_12 = arith.constant 0 : index
      %c0_13 = arith.constant 0 : index
      %18 = vector.load %arg3[%c0_12, %c0_13] : memref<1x256xf32, #tpu.memory_space<vmem>>, vector<1x256xf32>
      tpu.vector_store %arg3[%c0_12, %c0_13], %17 {strides = array<i32>} : memref<1x256xf32, #tpu.memory_space<vmem>>, vector<1x256xf32>,
    } else {
    }
    return
  }
  func.func @transform_0(%arg0: i32, %arg1: i32) -> (i32, i32) {
    %c0_i32 = arith.constant 0 : i32
    return %arg1, %arg0 : i32, i32
  }
  func.func @transform_1(%arg0: i32, %arg1: i32) -> (i32, i32) {
    %c0_i32 = arith.constant 0 : i32
    %c0_i32_0 = arith.constant 0 : i32
    return %c0_i32, %arg0 : i32, i32
  }
}

</mosaic_0001>

<bundles_post_ra>
// kernel: tpu_custom_call.1
= control target key start
LH: loop header
LB: loop body
LE: loop exit
PB: predicated region body
PF: predicated region fallthrough
CT: control target
= control target key end

     0   :  { %6 = vsyncpa [#allocation4], 0  ;;  %s209_s0 = inlined_call_operand.hbm [shape: f32[8,256], index: 0, kind: input, shape index: {}]   ;;  %s210_s1 = inlined_call_operand.hbm [shape: f32[1,256], index: 1, kind: output, shape index: {}]  }
   0x1   :  { %7 = vsyncpa [#allocation5], 0  ;;  %s161_s6 = smov [#allocation3]   ;;  %s113_s10 = scalar_lea.hbm %s209_s0, 256 }
   0x2   :  { %s14_s7 = sshll.u32 %s161_s6, 4  ;;  %p114_p0 = scmp.ne.s32.totalorder %s209_s0, %s113_s10  ;;  %s15_s7 = int_to_ptr.vmem [resolvable:$true] %s14_s7 }
   0x3   :  { %p117_p1 = scmp.lt.u32.totalorder %s113_s10, %s209_s0 }
   0x5   :  { %p119_p2 = pnand %p117_p1, %p114_p0 }
   0x7   :  { %122 = shalt.err (!%p119_p2)
}
   0x8   :  { %s123_s15 = scalar_lea.vmem %s15_s7, 256  ;;  %p128_p4 = scmp.lt.s32.totalorder %s15_s7, %s15_s7 }
   0x9   :  { %p124_p3 = scmp.ne.s32.totalorder %s15_s7, %s123_s15  ;;  %p129_p5 = scmp.lt.s32.totalorder %s123_s15, %s123_s15 }
   0xb   :  { %p130_p6 = por %p129_p5, %p128_p4 }
   0xd   :  { %p131_p7 = pnand %p130_p6, %p124_p3 }
   0xf   :  { %134 = shalt.err (!%p131_p7)
}
  0x10   :  { %17 = dma.hbm_to_vmem [thread:$0]  %s209_s0, 256, %s15_s7, [#allocation4]  }
  0x11   :  { %157 = dma.done.wait [#allocation4], 256  }
  0x12   :  { %158 = vsyncadd [#allocation4], 4294967040  ;;  %v25_v0 = vlaneseq  ;;  %v162_v2 = vmov 0.0   ;;  %v30_v3 = vld [vmem:[#allocation3] sm:$0xff]  ;;  %v31_v4 = vld [vmem:[#allocation3 + $0x8] sm:$0xff]  ;;  %s164_s0 = smov [#allocation6]  }
  0x13   :  { %109 = vrsqrt.f32 %v30_v3  ;;  %vm34_vm1 = vcmp.eq.f32.partialorder %v30_v3, inf  ;;  %v37_v6 = vand.u32 2147483648, %v30_v3  ;;  %vm36_vm2 = vcmp.eq.f32.partialorder %v30_v3, 0.0  ;;  %s96_s18 = sshll.u32 %s164_s0, 4  ;;  %s97_s18 = int_to_ptr.vmem [resolvable:$true] %s96_s18 }
  0x14   :  { %vm187_vm0 = vcmp.lt.s32.totalorder %v25_v0, 256  ;;  %111 = vrsqrt.f32 %v31_v4  ;;  %vm41_vm3 = vcmp.eq.f32.partialorder %v31_v4, inf  ;;  %v44_v9 = vand.u32 2147483648, %v31_v4  ;;  %s135_s19 = scalar_lea.vmem %s97_s18, 32  ;;  %p140_p9 = scmp.lt.s32.totalorder %s97_s18, %s97_s18 }
  0x15   :  { %29 = vst.msk [vmem:[#allocation2] sm:$0x3] %vm187_vm0, %v162_v2  ;;  %vm43_vm4 = vcmp.eq.f32.partialorder %v31_v4, 0.0  ;;  %v163_v19 = vmov 1966171168   ;;  %v66_v26 = vshrl.u32 %v25_v0, 7  ;;  %p136_p8 = scmp.ne.s32.totalorder %s97_s18, %s135_s19  ;;  %p141_p10 = scmp.lt.s32.totalorder %s135_s19, %s135_s19 }
  0x16   :  { %v63_v20 = vunpack.c.l.s4 %v163_v19 }
  0x17   :  { %p142_p11 = por %p141_p10, %p140_p9 }
  0x18   :  { %v64_v25 = vunpack.c.0.s8 %v63_v20 }
  0x19   :  { %p143_p12 = pnand %p142_p11, %p136_p8 }
  0x1a   :  { %v67_v31 = vsub.s32 %v64_v25, %v66_v26 }
  0x1c   :  { %v46_v34 = vld [vmem:[#allocation2] sm:$0x3] }
  0x1d   :  { %v110_v5 = vpop.eup %109 }
  0x1e   :  { %v112_v7 = vpop.eup %111  ;;  %v33_v8 = vmul.f32 %v110_v5, %v30_v3 }
  0x1f   :  { %v40_v10 = vmul.f32 %v112_v7, %v31_v4 }
  0x20   :  { %v35_v11 = vsel %vm34_vm1, %v30_v3, %v33_v8 }
  0x21   :  { %v38_v12 = vsel %vm36_vm2, %v37_v6, %v35_v11  ;;  %v42_v13 = vsel %vm41_vm3, %v31_v4, %v40_v10 }
  0x22   :  { %v45_v14 = vsel %vm43_vm4, %v44_v9, %v42_v13  ;;  %v47_v15 = vrot.slane %v38_v12, 4 }
  0x23   :  { %v53_v16 = vrot.slane %v45_v14, 4 }
  0x24   :  { %v48_v17 = vadd.f32 %v47_v15, %v38_v12 }
  0x25   :  { %v54_v18 = vadd.f32 %v53_v16, %v45_v14 }
  0x26   :  { %v49_v21 = vrot.slane %v48_v17, 2 }
  0x27   :  { %v55_v22 = vrot.slane %v54_v18, 2 }
  0x28   :  { %v50_v23 = vadd.f32 %v49_v21, %v48_v17 }
  0x29   :  { %v56_v24 = vadd.f32 %v55_v22, %v54_v18 }
  0x2a   :  { %v51_v27 = vrot.slane %v50_v23, 1 }
  0x2b   :  { %v57_v28 = vrot.slane %v56_v24, 1 }
  0x2c   :  { %v52_v29 = vadd.f32 %v51_v27, %v50_v23 }
  0x2d   :  { %v58_v30 = vadd.f32 %v57_v28, %v56_v24 }
  0x2f   :  { %v61_v32 = vcombine.low %v52_v29, %v58_v30 }
  0x31   :  { %v68_v33 = vrot.slane %v61_v32, %v67_v31 }
  0x33   :  { %v75_v35 = vrot.slane %v68_v33, %v67_v31 }
  0x35   :  { %v77_v36 = vadd.f32 %v75_v35, %v46_v34 }
  0x37   :  { %82 = vst.msk [vmem:[#allocation2] sm:$0x3] %vm187_vm0, %v77_v36 }
  0x3e   :  { %v86_v37 = vld [vmem:[#allocation2] sm:$0x3] }
  0x3f   :  { %v87_v38 = vmul.f32 0.125, %v86_v37 }
  0x41   :  { %v88_v39 = vsub.f32 0.0, %v87_v38 }
  0x43   :  { %89 = vst.msk [vmem:[#allocation6] sm:$0x3] %vm187_vm0, %v88_v39 }
  0x44   :  { %146 = shalt.err (!%p143_p12)
}
  0x45   :  { %s147_s22 = scalar_lea.hbm %s210_s1, 32 }
  0x46   :  { %p148_p13 = scmp.ne.s32.totalorder %s210_s1, %s147_s22  ;;  %p151_p0 = scmp.lt.u32.totalorder %s147_s22, %s210_s1 }
  0x48   :  { %p153_p1 = pnand %p151_p0, %p148_p13 }
  0x4a   :  { %156 = shalt.err (!%p153_p1)
}
  0x4b   :  { %99 = dma.vmem_to_hbm [thread:$0]  %s97_s18, 32, %s210_s1, [#allocation5]  }
  0x4c   :  { %159 = dma.done.wait [#allocation5], 32  }
  0x4d   :  { %160 = vsyncadd [#allocation5], 4294967264 }
  0x4e   :  { %103 = vsyncpa [#allocation4], 1 }
  0x4f   :  { %104 = vsyncpa [#allocation5], 1 }

</bundles_post_ra>
